<compile_context>
chip_gen: v7x
topology: tpu7x:2x2x1
jax: 0.10.0
libtpu: 0.0.40
codegen_flags: <defaults>
</compile_context>

<pallas_src>
import jax
import jax.numpy as jnp
from jax.experimental import pallas as pl
from jax.experimental.pallas import tpu as pltpu


def _cast_copy_kernel(x_ref, o_ref):
    # The only live computation in ODEBlock.forward: cast the input to float32.
    o_ref[...] = x_ref[...].astype(jnp.float32)
    # TODO(synk): the reference's odeint(odefunc, oui, [0,1], rtol=atol=1e-3)
    # is dead code whose result forward() discards; it is intentionally elided.


def _row_tile(rows: int, lanes: int, itemsize: int, max_block_bytes: int) -> int:
    """Row tile for an (rows, lanes) -> f32 cast-copy.

    Budgeted by the f32 output (4 B/elem), rounded to the input dtype's
    sublane pack granularity (f32: 8, bf16: 16, int8: 32 rows), and capped so
    that — when there are enough rows — the cdiv grid has at least 2 steps.
    Returned tile is always a legal block dim (multiple of 8, or == rows).
    """
    pack = max(1, 4 // max(1, itemsize))
    step = 8 * pack
    row_cap = max(1, max_block_bytes // (lanes * 4))

    if rows <= row_cap:
        tile = rows                                   # full extent: always legal
    else:
        tile = min(rows, max(step, (row_cap // step) * step))

    if rows >= 2 * step:
        # Ensure >=2 grid steps so the 'parallel' axis has work for both
        # TensorCores on v7x (no-op cost on single-core v5e/v6e).
        half = (((rows + 1) // 2) + step - 1) // step * step
        tile = min(tile, half)                        # multiple of step here
    return tile


def _tiled_cast_copy_2d(x2, *, max_block_bytes):
    """Cast-copy a 2-D array to float32 with a row-tiled, pipelined Pallas copy."""
    rows, lanes = x2.shape
    tile = _row_tile(rows, lanes, jnp.dtype(x2.dtype).itemsize, max_block_bytes)
    grid = (pl.cdiv(rows, tile),)
    return pl.pallas_call(
        _cast_copy_kernel,
        out_shape=jax.ShapeDtypeStruct((rows, lanes), jnp.float32),
        grid=grid,
        in_specs=[pl.BlockSpec((tile, lanes), lambda i: (i, 0))],
        out_specs=pl.BlockSpec((tile, lanes), lambda i: (i, 0)),
        compiler_params=pltpu.CompilerParams(
            dimension_semantics=("parallel",)),
    )(x2)


def odeblock_forward(x, *, short_circuit_f32=True, max_lanes=8192,
                     max_block_bytes=2 * 1024 * 1024):
    """x: (N, C, H, W). Returns x cast to float32 (reference semantics)."""
    orig_shape = x.shape

    # Highest-value optimization: f32 input => forward() is an identity.
    if short_circuit_f32 and x.dtype == jnp.float32:
        return x

    total = 1
    for d in orig_shape:
        total *= int(d)

    # Prefer a lane-dense (rows, L) view with L a large multiple of 128 so the
    # f32 stores are full-width (unmasked vst) regardless of H*W.
    L = 0
    cand = 128
    while cand <= max_lanes:
        if total % cand == 0:
            L = cand
        cand += 128

    if L:
        rows, lanes = total // L, L
    elif x.ndim >= 2:
        # Fallback: fold leading dims onto sublanes, last two (H*W) onto lanes.
        lanes = int(orig_shape[-1]) * int(orig_shape[-2])
        rows = total // lanes
    else:
        rows, lanes = 1, max(total, 1)

    x2 = x.reshape(rows, lanes)
    out2 = _tiled_cast_copy_2d(x2, max_block_bytes=max_block_bytes)
    return out2.reshape(orig_shape)


if __name__ == "__main__":
    key = jax.random.PRNGKey(0)
    N, C, H, W = 2, 4, 16, 16

    # Case 1: float32 input — forward() short-circuits (identity, no copy).
    x_f32 = jax.random.normal(key, (N, C, H, W), dtype=jnp.float32)
    y0 = jax.block_until_ready(odeblock_forward(x_f32))
    assert y0.shape == (N, C, H, W) and y0.dtype == jnp.float32
    assert jnp.array_equal(y0, x_f32)

    # Case 2: bf16 input — lane-dense Pallas cast-copy kernel runs.
    x_bf16 = x_f32.astype(jnp.bfloat16)
    y1 = jax.block_until_ready(odeblock_forward(x_bf16))
    assert y1.shape == (N, C, H, W) and y1.dtype == jnp.float32
    assert jnp.array_equal(y1, x_bf16.astype(jnp.float32))

    # Case 3: force the Pallas path on f32 with a tiny block budget so the
    # multi-step cdiv grid (sharded 'parallel' axis) is exercised.
    y2 = jax.block_until_ready(
        odeblock_forward(x_f32, short_circuit_f32=False,
                         max_lanes=128, max_block_bytes=4096))
    assert y2.dtype == jnp.float32
    assert jnp.array_equal(y2, x_f32)

    # Case 4: element count not a multiple of 128 -> (rows, H*W) fallback with
    # full-extent (non-8/128) block dims.
    x_odd = jax.random.normal(key, (1, 3, 7, 7), dtype=jnp.bfloat16)
    y3 = jax.block_until_ready(odeblock_forward(x_odd))
    assert y3.shape == (1, 3, 7, 7) and y3.dtype == jnp.float32
    assert jnp.array_equal(y3, x_odd.astype(jnp.float32))

    print("KERNEL_OK")
</pallas_src>

<mosaic_0001>
module attributes {stable_mosaic.version = 11 : i64} {
  func.func @_cast_copy_kernel(%arg0: i32, %arg1: memref<1x2048xbf16, #tpu.memory_space<vmem>>, %arg2: memref<1x2048xf32, #tpu.memory_space<vmem>>) attributes {dimension_semantics = [#tpu.dimension_semantics<parallel>], iteration_bounds = array<i64: 1>, scalar_prefetch = 0 : i64, scratch_operands = 0 : i64, tpu.core_type = #tpu.core_type<tc>, window_params = [{transform_indices = @transform_0, window_bounds = array<i64: 1, 2048>}, {transform_indices = @transform_1, window_bounds = array<i64: 1, 2048>}]} {
    %c0 = arith.constant 0 : index
    %c0_0 = arith.constant 0 : index
    %0 = vector.load %arg1[%c0, %c0_0] : memref<1x2048xbf16, #tpu.memory_space<vmem>>, vector<1x2048xbf16>
    %1 = arith.extf %0 : vector<1x2048xbf16> to vector<1x2048xf32>
    %c0_1 = arith.constant 0 : index
    %c0_2 = arith.constant 0 : index
    %2 = vector.load %arg2[%c0_1, %c0_2] : memref<1x2048xf32, #tpu.memory_space<vmem>>, vector<1x2048xf32>
    tpu.vector_store %arg2[%c0_1, %c0_2], %1 {strides = array<i32>} : memref<1x2048xf32, #tpu.memory_space<vmem>>, vector<1x2048xf32>,
    return
  }
  func.func @transform_0(%arg0: i32) -> (i32, i32) {
    %c0_i32 = arith.constant 0 : i32
    %c0_i32_0 = arith.constant 0 : i32
    return %arg0, %c0_i32 : i32, i32
  }
  func.func @transform_1(%arg0: i32) -> (i32, i32) {
    %c0_i32 = arith.constant 0 : i32
    %c0_i32_0 = arith.constant 0 : i32
    return %arg0, %c0_i32 : i32, i32
  }
}

</mosaic_0001>

<bundles_post_ra>
// kernel: tpu_custom_call.1
= control target key start
LH: loop header
LB: loop body
LE: loop exit
PB: predicated region body
PF: predicated region fallthrough
CT: control target
= control target key end

     0   :  { %6 = vsyncpa [#allocation3], 0  ;;  %s168_s0 = inlined_call_operand.hbm [shape: bf16[1,2048], index: 0, kind: input, shape index: {}]   ;;  %s169_s1 = inlined_call_operand.hbm [shape: f32[1,2048], index: 1, kind: output, shape index: {}]  }
   0x1   :  { %7 = vsyncpa [#allocation4], 0  ;;  %s131_s6 = smov [#allocation2]   ;;  %s83_s10 = scalar_lea.hbm %s168_s0, 256 }
   0x2   :  { %s14_s7 = sshll.u32 %s131_s6, 4  ;;  %p84_p0 = scmp.ne.s32.totalorder %s168_s0, %s83_s10  ;;  %s15_s7 = int_to_ptr.vmem [resolvable:$true] %s14_s7 }
   0x3   :  { %p87_p1 = scmp.lt.u32.totalorder %s83_s10, %s168_s0 }
   0x5   :  { %p89_p2 = pnand %p87_p1, %p84_p0 }
   0x7   :  { %92 = shalt.err (!%p89_p2)
}
   0x8   :  { %s93_s15 = scalar_lea.vmem %s15_s7, 256  ;;  %p98_p4 = scmp.lt.s32.totalorder %s15_s7, %s15_s7 }
   0x9   :  { %p94_p3 = scmp.ne.s32.totalorder %s15_s7, %s93_s15  ;;  %p99_p5 = scmp.lt.s32.totalorder %s93_s15, %s93_s15 }
   0xb   :  { %p100_p6 = por %p99_p5, %p98_p4 }
   0xd   :  { %p101_p7 = pnand %p100_p6, %p94_p3 }
   0xf   :  { %104 = shalt.err (!%p101_p7)
}
  0x10   :  { %17 = dma.hbm_to_vmem [thread:$0]  %s168_s0, 256, %s15_s7, [#allocation3]  }
  0x11   :  { %127 = dma.done.wait [#allocation3], 256  }
  0x12   :  { %128 = vsyncadd [#allocation3], 4294967040  ;;  %v34_v0 = vlaneseq  ;;  %v132_v1 = vmov 1966171168   ;;  %v21_v6 = vld [vmem:[#allocation2] sm:$0xff]  ;;  %v22_v7 = vld [vmem:[#allocation2 + $0x8] sm:$0xff] }
  0x13   :  { %v32_v2 = vunpack.c.l.s4 %v132_v1  ;;  %v23_v8 = vunpack.c.l.bf16 %v21_v6  ;;  %v24_v9 = vunpack.c.h.bf16 %v21_v6  ;;  %v25_v10 = vunpack.c.l.bf16 %v22_v7  ;;  %s133_s18 = smov [#allocation5]  }
  0x14   :  { %v35_v3 = vshrl.u32 %v34_v0, 7  ;;  %v26_v11 = vunpack.c.h.bf16 %v22_v7  ;;  %s71_s19 = sshll.u32 %s133_s18, 4  ;;  %s72_s19 = int_to_ptr.vmem [resolvable:$true] %s71_s19 }
  0x15   :  { %v33_v4 = vunpack.c.0.s8 %v32_v2  ;;  %s105_s0 = scalar_lea.vmem %s72_s19, 256  ;;  %p110_p9 = scmp.lt.s32.totalorder %s72_s19, %s72_s19 }
  0x16   :  { %p106_p8 = scmp.ne.s32.totalorder %s72_s19, %s105_s0  ;;  %p111_p10 = scmp.lt.s32.totalorder %s105_s0, %s105_s0 }
  0x17   :  { %v36_v5 = vsub.s32 %v33_v4, %v35_v3 }
  0x18   :  { %p112_p11 = por %p111_p10, %p110_p9 }
  0x19   :  { %v37_v12 = vrot.slane %v23_v8, %v36_v5  ;;  %v44_v13 = vrot.slane %v24_v9, %v36_v5  ;;  %v52_v14 = vrot.slane %v25_v10, %v36_v5  ;;  %v59_v15 = vrot.slane %v26_v11, %v36_v5 }
  0x1a   :  { %p113_p12 = pnand %p112_p11, %p106_p8 }
  0x1b   :  { %v45_v16 = vcombine.low %v37_v12, %v44_v13  ;;  %v60_v17 = vcombine.low %v52_v14, %v59_v15 }
  0x1d   :  { %63 = vst [vmem:[#allocation5] sm:$0xff] %v45_v16  ;;  %64 = vst [vmem:[#allocation5 + $0x8] sm:$0xff] %v60_v17 }
  0x1e   :  { %116 = shalt.err (!%p113_p12)
}
  0x1f   :  { %s117_s22 = scalar_lea.hbm %s169_s1, 256 }
  0x20   :  { %p118_p13 = scmp.ne.s32.totalorder %s169_s1, %s117_s22  ;;  %p121_p0 = scmp.lt.u32.totalorder %s117_s22, %s169_s1 }
  0x22   :  { %p123_p1 = pnand %p121_p0, %p118_p13 }
  0x24   :  { %126 = shalt.err (!%p123_p1)
}
  0x25   :  { %74 = dma.vmem_to_hbm [thread:$0]  %s72_s19, 256, %s169_s1, [#allocation4]  }
  0x26   :  { %129 = dma.done.wait [#allocation4], 256  }
  0x27   :  { %130 = vsyncadd [#allocation4], 4294967040 }
  0x28   :  { %78 = vsyncpa [#allocation3], 1 }
  0x29   :  { %79 = vsyncpa [#allocation4], 1 }

</bundles_post_ra>
